<compile_context>
chip_gen: v6e
topology: v6e:2x2x1
jax: 0.10.0
libtpu: 0.0.40
codegen_flags: <defaults>
</compile_context>

<pallas_src>
import functools

import jax
import jax.numpy as jnp
from jax import lax
from jax.experimental import pallas as pl
from jax.experimental.pallas import tpu as pltpu

LANE = 128


# ---------------------------------------------------------------------------
# Small helpers
# ---------------------------------------------------------------------------
def _round_up(x, m):
    return (x + m - 1) // m * m


def _pad_axis(x, target, axis):
    pad = target - x.shape[axis]
    if pad <= 0:
        return x
    widths = [(0, 0)] * x.ndim
    widths[axis] = (0, pad)
    return jnp.pad(x, widths)


def _physical_vmem_bytes():
    try:
        info = pltpu.get_tpu_info()
        for name in ("vmem_capacity_bytes", "vmem_bytes", "vmem_size_bytes"):
            v = getattr(info, name, None)
            if v:
                return int(v)
    except Exception:
        pass
    return 64 << 20  # conservative (v7x) fallback


def _usable_vmem_bytes():
    phys = min(_physical_vmem_bytes(), 128 << 20)
    # leave headroom for compiler scratch; never report less than 16 MiB
    return max(phys - (8 << 20), 16 << 20)


def _clamp_vmem_limit(needed, usable):
    return int(min(max(needed, 16 << 20), usable, 100 << 20))


_TM_CANDIDATES = (2048, 1024, 512, 256, 128)


def _plan_tiles(num_nodes, tile=None):
    """Pick (n_pad, tm, tk): tile first, then pad N up to a multiple of it."""
    n0 = _round_up(max(int(num_nodes), LANE), LANE)
    if tile is not None:
        tm = _round_up(max(int(tile), LANE), LANE)
    else:
        # Large row tiles amortize the ~0.35us per-grid-step overhead and cut Z re-reads,
        # but keep >= 2 row tiles so the "parallel" axis shards across v7x's 2 TensorCores.
        limit = max(LANE, n0 // 2)
        tm = LANE
        for cand in _TM_CANDIDATES:
            if cand <= limit:
                tm = cand
                break
    n_pad = _round_up(n0, tm)
    tk = 512 if (tm % 512 == 0) else tm  # tk divides tm, hence divides n_pad
    return n_pad, tm, tk


# ---------------------------------------------------------------------------
# Shared epilogue: (optional) dense transform + bias + ReLU + masked log_softmax
# ---------------------------------------------------------------------------
def _epilogue(h, wt_ref, b_ref, *, transform, add_bias, relu, log_softmax,
              valid_channels):
    if transform:
        h = jnp.dot(h.astype(jnp.bfloat16), wt_ref[...],
                    preferred_element_type=jnp.float32)
    if add_bias:
        h = h + b_ref[...].astype(jnp.float32)
    if relu:
        h = jnp.maximum(h, 0.0)
    if log_softmax:
        # log_softmax over the valid (unpadded) feature lanes only.
        col = lax.broadcasted_iota(jnp.int32, h.shape, dimension=1)
        h = jnp.where(col < valid_channels, h, jnp.full_like(h, -1e30))
        m = jnp.max(h, axis=-1, keepdims=True)
        lse = m + jnp.log(jnp.sum(jnp.exp(h - m), axis=-1, keepdims=True))
        h = h - lse
    return h


# ---------------------------------------------------------------------------
# Fused GCN layer kernel, resident-Z variant:
#   out = epilogue(A_hat_rowtile @ Z_full)     grid = (N/TM,)
# ---------------------------------------------------------------------------
def fused_resident_kernel(a_ref, z_ref, wt_ref, b_ref, o_ref, *,
                          transform, add_bias, relu, log_softmax, valid_channels):
    h = jnp.dot(a_ref[...], z_ref[...], preferred_element_type=jnp.float32)
    h = _epilogue(h, wt_ref, b_ref, transform=transform, add_bias=add_bias,
                  relu=relu, log_softmax=log_softmax, valid_channels=valid_channels)
    o_ref[...] = h.astype(o_ref.dtype)


# ---------------------------------------------------------------------------
# Fused GCN layer kernel, K-tiled variant:
#   acc += A_hat_tile @ Z_ktile ; epilogue on the last K step.   grid = (N/TM, N/TK)
# ---------------------------------------------------------------------------
def fused_ktiled_kernel(a_ref, z_ref, wt_ref, b_ref, o_ref, acc_ref, *,
                        transform, add_bias, relu, log_softmax, valid_channels):
    k = pl.program_id(1)
    part = jnp.dot(a_ref[...], z_ref[...], preferred_element_type=jnp.float32)

    @pl.when(k == 0)
    def _():
        acc_ref[...] = part          # write (no zero-init store + add)

    @pl.when(k > 0)
    def _():
        acc_ref[...] += part

    @pl.when(k == pl.num_programs(1) - 1)
    def _():
        h = _epilogue(acc_ref[...], wt_ref, b_ref, transform=transform,
                      add_bias=add_bias, relu=relu, log_softmax=log_softmax,
                      valid_channels=valid_channels)
        o_ref[...] = h.astype(o_ref.dtype)


def gcn_fused_layer(a_hat, z, w_t, b, *, transform, add_bias, relu, log_softmax,
                    valid_channels, out_dtype, tm, tk, force_ktiled=False):
    n_pad = a_hat.shape[0]
    c_z = z.shape[1]
    c_out = w_t.shape[1] if transform else c_z
    out_isz = jnp.dtype(out_dtype).itemsize
    usable = _usable_vmem_bytes()
    w_bytes = 2 * w_t.shape[0] * w_t.shape[1] * 2

    bytes_resident = (2 * tm * n_pad * 2 + 2 * n_pad * c_z * 2 + w_bytes
                      + 2 * tm * c_out * out_isz + (4 << 20))
    bytes_ktiled = (2 * tm * tk * 2 + 2 * tk * c_z * 2 + w_bytes
                    + 2 * tm * c_out * out_isz + tm * c_z * 4 + (4 << 20))

    resident = (not force_ktiled) and (bytes_resident <= usable)

    if resident:
        kernel = functools.partial(
            fused_resident_kernel, transform=transform, add_bias=add_bias,
            relu=relu, log_softmax=log_softmax, valid_channels=valid_channels)
        return pl.pallas_call(
            kernel,
            out_shape=jax.ShapeDtypeStruct((n_pad, c_out), out_dtype),
            grid_spec=pltpu.PrefetchScalarGridSpec(
                num_scalar_prefetch=0,
                grid=(n_pad // tm,),
                in_specs=[
                    pl.BlockSpec((tm, n_pad), lambda i: (i, 0)),   # A_hat row slab
                    pl.BlockSpec((n_pad, c_z), lambda i: (0, 0)),  # Z fully resident
                    pl.BlockSpec(w_t.shape, lambda i: (0, 0)),     # W^T resident
                    pl.BlockSpec((1, c_out), lambda i: (0, 0)),    # bias resident
                ],
                out_specs=pl.BlockSpec((tm, c_out), lambda i: (i, 0)),
            ),
            compiler_params=pltpu.CompilerParams(
                dimension_semantics=("parallel",),
                vmem_limit_bytes=_clamp_vmem_limit(bytes_resident, usable)),
        )(a_hat, z, w_t, b)

    kernel = functools.partial(
        fused_ktiled_kernel, transform=transform, add_bias=add_bias,
        relu=relu, log_softmax=log_softmax, valid_channels=valid_channels)
    return pl.pallas_call(
        kernel,
        out_shape=jax.ShapeDtypeStruct((n_pad, c_out), out_dtype),
        grid_spec=pltpu.PrefetchScalarGridSpec(
            num_scalar_prefetch=0,
            grid=(n_pad // tm, n_pad // tk),
            in_specs=[
                pl.BlockSpec((tm, tk), lambda i, k: (i, k)),   # A_hat tile stream
                pl.BlockSpec((tk, c_z), lambda i, k: (k, 0)),  # Z K-tile
                pl.BlockSpec(w_t.shape, lambda i, k: (0, 0)),  # W^T resident
                pl.BlockSpec((1, c_out), lambda i, k: (0, 0)),  # bias resident
            ],
            out_specs=pl.BlockSpec((tm, c_out), lambda i, k: (i, 0)),  # resident over K
            scratch_shapes=[pltpu.VMEM((tm, c_z), jnp.float32)],       # f32 accumulator
        ),
        compiler_params=pltpu.CompilerParams(
            dimension_semantics=("parallel", "arbitrary"),
            vmem_limit_bytes=_clamp_vmem_limit(bytes_ktiled, usable)),
    )(a_hat, z, w_t, b)


# ---------------------------------------------------------------------------
# Dense pre-transform kernel (only when padded Cin > padded Cout):  Z = X @ W^T
# ---------------------------------------------------------------------------
def dense_kernel(x_ref, wt_ref, o_ref):
    o_ref[...] = jnp.dot(x_ref[...], wt_ref[...],
                         preferred_element_type=jnp.float32).astype(o_ref.dtype)


def dense_transform(x, w_t, *, out_dtype, tm):
    n_pad, c_in = x.shape
    c_out = w_t.shape[1]
    usable = _usable_vmem_bytes()
    need = (2 * tm * c_in * 2 + 2 * c_in * c_out * 2
            + 2 * tm * c_out * jnp.dtype(out_dtype).itemsize + (4 << 20))
    return pl.pallas_call(
        dense_kernel,
        out_shape=jax.ShapeDtypeStruct((n_pad, c_out), out_dtype),
        grid_spec=pltpu.PrefetchScalarGridSpec(
            num_scalar_prefetch=0,
            grid=(n_pad // tm,),
            in_specs=[
                pl.BlockSpec((tm, c_in), lambda i: (i, 0)),
                pl.BlockSpec((c_in, c_out), lambda i: (0, 0)),
            ],
            out_specs=pl.BlockSpec((tm, c_out), lambda i: (i, 0)),
        ),
        compiler_params=pltpu.CompilerParams(
            dimension_semantics=("parallel",),
            vmem_limit_bytes=_clamp_vmem_limit(need, usable)),
    )(x, w_t)


# ---------------------------------------------------------------------------
# Glue: dense symmetrically-normalized adjacency (PyG convention:
# edge_index[0]=source, edge_index[1]=destination; duplicate edges accumulate).
# ---------------------------------------------------------------------------
def normalized_adjacency(edge_index, num_nodes):
    src, dst = edge_index[0], edge_index[1]
    a = jnp.zeros((num_nodes, num_nodes), jnp.float32)
    a = a.at[dst, src].add(1.0)                      # scatter-add (multigraph-safe)
    a = a + jnp.eye(num_nodes, dtype=jnp.float32)    # add self-loops
    deg = a.sum(axis=1)
    dinv = jnp.where(deg > 0, 1.0 / jnp.sqrt(deg), 0.0)
    return dinv[:, None] * a * dinv[None, :]


# ---------------------------------------------------------------------------
# Module wrapper (mirrors the PyTorch GCN, eval-mode forward)
# ---------------------------------------------------------------------------
class GCNPallas:
    def __init__(self, in_channels, hidden_channels, hidden_channels2,
                 out_channels, key, *, tile=None):
        self.in_channels = in_channels
        self.hidden_channels = hidden_channels
        self.hidden_channels2 = hidden_channels2
        self.out_channels = out_channels
        self.tile = tile

        def glorot(k, fan_out, fan_in):
            limit = jnp.sqrt(6.0 / (fan_in + fan_out))
            return jax.random.uniform(k, (fan_out, fan_in), jnp.float32,
                                      -limit, limit)

        k1, k2, k3 = jax.random.split(key, 3)
        # raw f32 params, PyG GCNConv layout: weight (out, in), bias (out,)
        self.w1 = glorot(k1, hidden_channels, in_channels)
        self.b1 = jnp.zeros((hidden_channels,), jnp.float32)
        self.w2 = glorot(k2, hidden_channels2, hidden_channels)
        self.b2 = jnp.zeros((hidden_channels2,), jnp.float32)
        self.w3 = glorot(k3, out_channels, hidden_channels2)
        self.b3 = jnp.zeros((out_channels,), jnp.float32)

        # Hoisted preprocessing: pad channel dims to 128 lanes (lane-dense stores),
        # transpose weights once, cast matmul operands to bf16 (f32 accum in-kernel).
        self._c_in = _round_up(in_channels, LANE)
        self._c_h1 = _round_up(hidden_channels, LANE)
        self._c_h2 = _round_up(hidden_channels2, LANE)
        self._c_out = _round_up(out_channels, LANE)

        def prep_w(w, c_in_pad, c_out_pad):
            wt = _pad_axis(_pad_axis(w.T, c_in_pad, 0), c_out_pad, 1)
            return wt.astype(jnp.bfloat16)

        def prep_b(bias, c_pad):
            return _pad_axis(bias.reshape(1, -1), c_pad, 1).astype(jnp.float32)

        self.w1_t = prep_w(self.w1, self._c_in, self._c_h1)
        self.b1_p = prep_b(self.b1, self._c_h1)
        self.w2_t = prep_w(self.w2, self._c_h1, self._c_h2)
        self.b2_p = prep_b(self.b2, self._c_h2)
        self.w3_t = prep_w(self.w3, self._c_h2, self._c_out)
        self.b3_p = prep_b(self.b3, self._c_out)
        self._w_dummy = jnp.zeros((LANE, LANE), jnp.bfloat16)  # unread when transform=False

    def precompute_adjacency(self, edge_index, num_nodes):
        """Build + normalize + pad + cast A_hat once per graph (hoisted out of forward)."""
        n_pad, tm, tk = _plan_tiles(num_nodes, self.tile)
        a = normalized_adjacency(edge_index, num_nodes)
        a = _pad_axis(_pad_axis(a, n_pad, 0), n_pad, 1).astype(jnp.bfloat16)
        return {"a_hat": a, "num_nodes": num_nodes, "n_pad": n_pad, "tm": tm, "tk": tk}

    def _layer(self, a_hat, z, w_t, b_p, *, relu, log_softmax, valid_channels,
               out_dtype, tm, tk, force_ktiled):
        c_z_pad = z.shape[1]
        c_out_pad = w_t.shape[1]
        if c_z_pad > c_out_pad:
            # Padded input wider than padded output: transform first (narrower
            # aggregation operand), then aggregate without an epilogue transform.
            zw = dense_transform(z, w_t, out_dtype=jnp.bfloat16, tm=tm)
            return gcn_fused_layer(a_hat, zw, self._w_dummy, b_p, transform=False,
                                   add_bias=True, relu=relu, log_softmax=log_softmax,
                                   valid_channels=valid_channels, out_dtype=out_dtype,
                                   tm=tm, tk=tk, force_ktiled=force_ktiled)
        # Fused: acc = A_hat @ Z, then acc @ W^T + b (+ReLU / log_softmax) in the epilogue.
        return gcn_fused_layer(a_hat, z, w_t, b_p, transform=True,
                               add_bias=True, relu=relu, log_softmax=log_softmax,
                               valid_channels=valid_channels, out_dtype=out_dtype,
                               tm=tm, tk=tk, force_ktiled=force_ktiled)

    def __call__(self, x, graph, *, force_ktiled=False):
        n = graph["num_nodes"]
        n_pad, tm, tk = graph["n_pad"], graph["tm"], graph["tk"]
        a_hat = graph["a_hat"]

        xp = _pad_axis(_pad_axis(x, n_pad, 0), self._c_in, 1).astype(jnp.bfloat16)

        # ---- layer 1: GCNConv -> ReLU (dropout is identity in eval mode) ----
        h = self._layer(a_hat, xp, self.w1_t, self.b1_p, relu=True,
                        log_softmax=False, valid_channels=self._c_h1,
                        out_dtype=jnp.bfloat16, tm=tm, tk=tk, force_ktiled=force_ktiled)

        # ---- layer 2: GCNConv -> ReLU (dropout is identity in eval mode) ----
        h2 = self._layer(a_hat, h, self.w2_t, self.b2_p, relu=True,
                         log_softmax=False, valid_channels=self._c_h2,
                         out_dtype=jnp.bfloat16, tm=tm, tk=tk, force_ktiled=force_ktiled)

        # ---- layer 3: GCNConv -> log_softmax(dim=1) ----
        out = self._layer(a_hat, h2, self.w3_t, self.b3_p, relu=False,
                          log_softmax=True, valid_channels=self.out_channels,
                          out_dtype=jnp.float32, tm=tm, tk=tk, force_ktiled=force_ktiled)

        return out[:n, :self.out_channels]


if __name__ == "__main__":
    key = jax.random.PRNGKey(0)
    k_x, k_w, k_e = jax.random.split(key, 3)

    # Small graph: 256 nodes, 200 input features (pads to 256 -> exercises the
    # pre-transform path in layer 1), hidden 32/16, 4 output classes.
    num_nodes = 256
    in_channels, hidden, hidden2, out_channels = 200, 32, 16, 4

    x = jax.random.normal(k_x, (num_nodes, in_channels), jnp.float32)

    # Deterministic edges: a ring plus 512 random chords (no self-loops).
    src_ring = jnp.arange(num_nodes, dtype=jnp.int32)
    dst_ring = (src_ring + 1) % num_nodes
    k_e1, k_e2 = jax.random.split(k_e)
    rnd_src = jax.random.randint(k_e1, (512,), 0, num_nodes, dtype=jnp.int32)
    rnd_off = jax.random.randint(k_e2, (512,), 1, num_nodes, dtype=jnp.int32)
    rnd_dst = (rnd_src + rnd_off) % num_nodes
    edge_index = jnp.stack([jnp.concatenate([src_ring, rnd_src]),
                            jnp.concatenate([dst_ring, rnd_dst])], axis=0)

    model = GCNPallas(in_channels, hidden, hidden2, out_channels, k_w)
    graph = model.precompute_adjacency(edge_index, num_nodes)   # cached across forwards

    # Default plan: Z resident (single-axis grid).  Also force the K-tiled
    # accumulator path (grid (2, 2)) to exercise both variants.
    out = jax.block_until_ready(model(x, graph))
    out_kt = jax.block_until_ready(model(x, graph, force_ktiled=True))

    assert out.shape == (num_nodes, out_channels)
    # log_softmax rows should sum to ~1 in probability space.
    assert jnp.allclose(jnp.exp(out).sum(axis=1), 1.0, atol=1e-3)

    # Pure-JAX reference with matching bf16-operand / f32-accumulation numerics.
    a_ref = normalized_adjacency(edge_index, num_nodes).astype(jnp.bfloat16)

    def mm(p, q):
        return jnp.dot(p.astype(jnp.bfloat16), q.astype(jnp.bfloat16),
                       preferred_element_type=jnp.float32)

    z1 = mm(x, model.w1.T).astype(jnp.bfloat16)                        # pre-transform
    h1 = jnp.maximum(mm(a_ref, z1) + model.b1, 0.0).astype(jnp.bfloat16)
    agg2 = mm(a_ref, h1)
    h2 = jnp.maximum(mm(agg2.astype(jnp.bfloat16), model.w2.T) + model.b2,
                     0.0).astype(jnp.bfloat16)
    agg3 = mm(a_ref, h2)
    logits = mm(agg3.astype(jnp.bfloat16), model.w3.T) + model.b3
    ref = jax.nn.log_softmax(logits, axis=1)

    err = float(jnp.max(jnp.abs(out - ref)))
    err_kt = float(jnp.max(jnp.abs(out_kt - ref)))
    assert jnp.allclose(out, ref, atol=3e-2, rtol=3e-2), err
    assert jnp.allclose(out_kt, ref, atol=3e-2, rtol=3e-2), err_kt

    print("KERNEL_OK")
</pallas_src>

<mosaic_0001>
module attributes {stable_mosaic.version = 11 : i64} {
  func.func @dense_kernel(%arg0: i32, %arg1: memref<128x256xbf16, #tpu.memory_space<vmem>>, %arg2: memref<256x128xbf16, #tpu.memory_space<vmem>>, %arg3: memref<128x128xbf16, #tpu.memory_space<vmem>>) attributes {dimension_semantics = [#tpu.dimension_semantics<parallel>], iteration_bounds = array<i64: 2>, scalar_prefetch = 0 : i64, scratch_operands = 0 : i64, tpu.core_type = #tpu.core_type<tc>, window_params = [{transform_indices = @transform_0, window_bounds = array<i64: 128, 256>}, {pipeline_mode = #tpu.pipeline_mode<synchronous>, transform_indices = @transform_1, window_bounds = array<i64: 256, 128>}, {transform_indices = @transform_2, window_bounds = array<i64: 128, 128>}]} {
    %c0 = arith.constant 0 : index
    %c0_0 = arith.constant 0 : index
    %0 = vector.load %arg1[%c0, %c0_0] : memref<128x256xbf16, #tpu.memory_space<vmem>>, vector<128x256xbf16>
    %c0_1 = arith.constant 0 : index
    %c0_2 = arith.constant 0 : index
    %1 = vector.load %arg2[%c0_1, %c0_2] : memref<256x128xbf16, #tpu.memory_space<vmem>>, vector<256x128xbf16>
    %cst = arith.constant dense<0.000000e+00> : vector<128x128xf32>
    %2 = tpu.matmul %0, %1, %cst {dimension_numbers = #tpu.dot_dimension_numbers<[1], [0], [0], [1], [0, 0, 1, 1], [], []>} : vector<128x256xbf16>, vector<256x128xbf16>, vector<128x128xf32> -> vector<128x128xf32>
    %3 = arith.truncf %2 : vector<128x128xf32> to vector<128x128xbf16>
    %c0_3 = arith.constant 0 : index
    %c0_4 = arith.constant 0 : index
    %4 = vector.load %arg3[%c0_3, %c0_4] : memref<128x128xbf16, #tpu.memory_space<vmem>>, vector<128x128xbf16>
    tpu.vector_store %arg3[%c0_3, %c0_4], %3 {strides = array<i32>} : memref<128x128xbf16, #tpu.memory_space<vmem>>, vector<128x128xbf16>,
    return
  }
  func.func @transform_0(%arg0: i32) -> (i32, i32) {
    %c0_i32 = arith.constant 0 : i32
    %c0_i32_0 = arith.constant 0 : i32
    return %arg0, %c0_i32 : i32, i32
  }
  func.func @transform_1(%arg0: i32) -> (i32, i32) {
    %c0_i32 = arith.constant 0 : i32
    %c0_i32_0 = arith.constant 0 : i32
    %c0_i32_1 = arith.constant 0 : i32
    return %c0_i32, %c0_i32_0 : i32, i32
  }
  func.func @transform_2(%arg0: i32) -> (i32, i32) {
    %c0_i32 = arith.constant 0 : i32
    %c0_i32_0 = arith.constant 0 : i32
    return %arg0, %c0_i32 : i32, i32
  }
}

</mosaic_0001>

<bundles_post_ra>
// kernel: tpu_custom_call.1
= control target key start
LH: loop header
LB: loop body
LE: loop exit
PB: predicated region body
PF: predicated region fallthrough
CT: control target
= control target key end

     0   :  { %7 = vsyncpa [#allocation3], 0  ;;  %s1348_s0 = inlined_call_operand.hbm [shape: bf16[256,256], index: 0, kind: input, shape index: {}]   ;;  %s1349_s1 = inlined_call_operand.hbm [shape: bf16[256,128], index: 1, kind: input, shape index: {}]   ;;  %s1350_s2 = inlined_call_operand.hbm [shape: bf16[256,128], index: 2, kind: output, shape index: {}]  }
   0x1   :  { %9 = vsyncpa [#allocation3 + $0x1], 0 }
   0x2   :  { %10 = vsyncpa [#allocation6], 0 }
   0x3   :  { %11 = vsyncpa [#allocation4], 0 }
   0x4   :  { %13 = vsyncpa [#allocation4 + $0x1], 0  ;;  %s1141_s9 = smov 0   ;;  %s1143_s10 = smov 0  }
   0x5   :  { %s1145_s11 = smov 0   ;;  %s1147_s12 = smov 0  }
   0x6 LB: > { %s1162_s13 = sadd.s32 4294967295, %s1115_s12   ;;  %s679_s14 = sadd.s32 4294967294, %s1115_s12   ;;  %s1115_s12 = sphi %s1147_s12, %s1372_s12   ;;  %s1111_s11 = sphi %s1145_s11, %s1371_s11   ;;  %s1107_s10 = sphi %s1143_s10, %s1370_s10   ;;  %s1103_s9 = sphi %s1141_s9, %s1369_s9  }
   0x7   : > { %p39_p0 = scmp.ne.s32.totalorder %s1107_s10, %s1103_s9  ;;  %p1351_p1 = scmp.eq.s32.totalorder %s1162_s13, 0 }
   0x8   : > { %p90_p3 = scmp.eq.s32.totalorder %s679_s14, 1  ;;  %p680_p5 = scmp.ge.s32.totalorder %s1115_s12, 1 }
   0x9   : > { %p1171_p4 = por %p1351_p1, %p39_p0  ;;  %p97_p7 = scmp.lt.s32.totalorder %s1115_s12, 3 }
   0xa   : > { %p1176_p6 = por %p90_p3, %p39_p0  ;;  %s1117_s18 = smov [#allocation5]  }
   0xb   : > { %s1355_s15 = scalar_select %p1171_p4, 1, 0 }
   0xc   : > { %s1356_s16 = scalar_select %p1176_p6, 1, 0 }
   0xd   : > { %p1181_p8 = pnand %p680_p5, %p97_p7  ;;  %s109_s19 = sshll.u32 %s1117_s18, 4  ;;  %s110_s19 = int_to_ptr.vmem [resolvable:$true] %s109_s19 }
   0xe   : > { %s1195_s21 = sadd.s32 1, %s1115_s12   ;;  %s26_s22 = sadd.s32 1, %s1111_s11 }
   0xf   : > { %s1357_s17 = scalar_select %p1181_p8, 1, 0 }
  0x10   : > { %p898_p9 = pneg %p1181_p8  ;;  %s23_s23 = ssub.s32 %s1115_s12, %s1195_s21 }
  0x11   : > { %s1004_s24 = scalar_lea.vmem %s110_s19, 2048  ;;  %p1012_p5 = scmp.lt.s32.totalorder %s110_s19, %s110_s19 }
  0x12   : > { %p1190_p11 = pnand %p898_p9, %p1351_p1  ;;  %p1005_p13 = scmp.ne.s32.totalorder %s110_s19, %s1004_s24 }
  0x13   : > { %p1013_p7 = scmp.lt.s32.totalorder %s1004_s24, %s1004_s24 }
  0x14   : > { %p995_p12 = pneg %p1190_p11 }
  0x15   : > { %p1014_p10 = por %p1013_p7, %p1012_p5 }
  0x16   : > { %p1007_p0 = pnand %p1005_p13, %p995_p12 }
  0x18   : > { %p1008_p3 = pneg %p1007_p0 }
  0x1a   : > { %p1015_p2 = pnand %p1014_p10, %p1008_p3 }
  0x1c   : > { %1018 = shalt.err (!%p1015_p2)
}
  0x1d   : > { %s1118_s25 = smov 64   ;;  %s1119_s26 = smov 4  }
  0x1e   : > { %901 = dma.hbm_to_vmem [thread:$0]  (!%p1190_p11), %s1349_s1, 2048, %s110_s19, [#allocation6], %s1118_s25, %s1118_s25, %s1119_s26  }
  0x1f   : > { %p24_p9 = scmp.eq.s32.totalorder %s23_s23, 0  ;;  %p33_p12 = scmp.ne.s32.totalorder %s1111_s11, %s1107_s10 }
  0x20   : > { %p34_p10 = scmp.eq.s32.totalorder %s1115_s12, 0  ;;  %p911_p2 = scmp.lt.s32.totalorder %s1115_s12, 2 }
  0x21   : > { %s1212_s29 = scalar_select %p24_p9, %s1111_s11, %s26_s22  }
  0x22   : > { %p35_p13 = por %p34_p10, %p33_p12  ;;  %p1359_p0 = scmp.eq.s32.totalorder %s1162_s13, 1 }
  0x23   : > { %s123_s3 = sand.u32 1, %s1111_s11   ;;  %s745_s4 = sshll.u32 %s1115_s12, 11 }
  0x24   : > { %p1216_p3 = por %p1359_p0, %p33_p12  ;;  %s683_s5 = sshll.u32 %s123_s3, 7 }
  0x25   : > { %s1225_s8 = scalar_lea.hbm %s1348_s0, %s745_s4  ;;  %s127_s14 = scalar_lea.vmem [#allocation2], %s683_s5 }
  0x26   : > { %s1360_s30 = scalar_select %p1216_p3, 1, 0 }
  0x27   : > { %s135_s18 = sshll.u32 %s127_s14, 4  ;;  %p1227_p11 = pnand %p911_p2, %p35_p13  ;;  %s1231_s18 = int_to_ptr.vmem [resolvable:$true] %s135_s18 }
  0x28   : > { %s1233_s20 = scalar_lea.sflag [#allocation3], %s123_s3  ;;  %s1019_s22 = scalar_lea.hbm %s1225_s8, 2048 }
  0x29   : > { %p1020_p5 = scmp.ne.s32.totalorder %s1225_s8, %s1019_s22  ;;  %p1021_p7 = pneg %p1227_p11 }
  0x2a   : > { %s1024_s25 = scalar_lea.hbm %s1348_s0, 4096  ;;  %p1025_p10 = scmp.lt.s32.totalorder %s1225_s8, %s1348_s0 }
  0x2b   : > { %p1022_p9 = pnand %p1021_p7, %p1020_p5  ;;  %p1026_p2 = scmp.lt.s32.totalorder %s1024_s25, %s1019_s22 }
  0x2d   : > { %p1023_p12 = pneg %p1022_p9  ;;  %p1027_p13 = por %p1026_p2, %p1025_p10 }
  0x2f   : > { %p1028_p0 = pnand %p1027_p13, %p1023_p12 }
  0x31   : > { %1031 = shalt.err (!%p1028_p0)
}
  0x32   : > { %s1032_s28 = scalar_lea.vmem %s1231_s18, 2048  ;;  %s1120_s3 = smov [#allocation2]  }
  0x33   : > { %p1033_p1 = scmp.ne.s32.totalorder %s1231_s18, %s1032_s28  ;;  %s1037_s4 = sshll.u32 %s1120_s3, 4  ;;  %s1038_s4 = int_to_ptr.vmem [resolvable:$false] %s1037_s4 }
  0x34   : > { %s1039_s5 = scalar_lea.vmem %s1038_s4, 4096  ;;  %p1040_p9 = scmp.lt.s32.totalorder %s1231_s18, %s1038_s4 }
  0x35   : > { %p1035_p6 = pnand %p1033_p1, %p1021_p7  ;;  %p1041_p3 = scmp.lt.s32.totalorder %s1039_s5, %s1032_s28 }
  0x37   : > { %p1036_p5 = pneg %p1035_p6  ;;  %p1042_p4 = por %p1041_p3, %p1040_p9 }
  0x39   : > { %p1043_p8 = pnand %p1042_p4, %p1036_p5 }
  0x3b   : > { %1046 = shalt.err (!%p1043_p8)
}
  0x3c   : > { %s1121_s6 = smov 128   ;;  %s1122_s7 = smov 8  }
  0x3d   : > { %905 = dma.hbm_to_vmem [thread:$0]  (!%p1227_p11), %s1225_s8, 2048, %s1231_s18, %s1233_s20, %s1121_s6, %s1121_s6, %s1122_s7  }
  0x3e   : > { %p1362_p1 = scmp.ne.s32.totalorder %s1357_s17, 0 }
  0x3f   : > { %s1257_s14 = sand.u32 (!%p1362_p1), 1, %s1107_s10   ;;  %p1363_p4 = scmp.ne.s32.totalorder (!%p1362_p1), %s1355_s15, 0 }
  0x40   : > { %147 = sbr.rel (%p1362_p1) target bundleno = 347 (0x15b), region = 28  ;;  %s688_s22 = sshll.u32 (!%p1362_p1), %s1257_s14, 7 }
  0x41   : > { %s150_s23 = scalar_lea.sflag (!%p1362_p1), [#allocation3], %s1257_s14  ;;  %s1261_s24 = scalar_lea.vmem (!%p1362_p1), [#allocation2], %s688_s22 }
  0x45   : > { %1090 = dma.done.wait (%p1363_p4), %s150_s23, 2048  }
  0x46   : > { %1092 = vsyncadd (%p1363_p4), %s150_s23, 4294965248  ;;  %p1364_p6 = scmp.eq.s32.totalorder %s1162_s13, 0 }
  0x48   : > { %1094 = dma.done.wait (%p1364_p6), [#allocation6], 2048   ;;  %p1365_p8 = pmov %p1364_p6 }
  0x49   : > { %v953_v0 = vld [vmem:[#allocation5 + $0x78] sm:$0xff]   ;;  %v955_v2 = vld [vmem:[#allocation5 + $0x70] sm:$0xff]   ;;  %v957_v4 = vld [vmem:[#allocation5 + $0x68] sm:$0xff]   ;;  %s690_s15 = sshll.u32 %s1257_s14, 6  ;;  %s762_s18 = sshll.u32 %s1162_s13, 10 }
  0x4a   : > { %1096 = vsyncadd (%p1365_p8), [#allocation6], 4294965248  ;;  %v954_v1 = vld [vmem:[#allocation5 + $0x38] sm:$0xff]   ;;  %810 = vmatprep.subr.bf16.mxu0 %v953_v0  ;;  %874 = vmatprep.subr.bf16.mxu1 %v953_v0  ;;  %v956_v3 = vld [vmem:[#allocation5 + $0x30] sm:$0xff]   ;;  %s1288_s17 = scalar_lea.vmem [#allocation7], %s690_s15  ;;  %s1303_s25 = scalar_lea.hbm %s1350_s2, %s762_s18 }
  0x4b   : > { %811 = vmatpush3.bf16.msra.mxu0 %v954_v1  ;;  %882 = vmatpush3.bf16.msra.mxu1 %v954_v1  ;;  %v958_v5 = vld [vmem:[#allocation5 + $0x28] sm:$0xff]   ;;  %v959_v6 = vld [vmem:[#allocation5 + $0x60] sm:$0xff]   ;;  %v961_v8 = vld [vmem:[#allocation5 + $0x58] sm:$0xff]   ;;  %s596_s8 = sshll.u32 %s1288_s17, 4  ;;  %s583_s13 = scalar_lea.sflag [#allocation4], %s1257_s14  ;;  %s1298_s8 = int_to_ptr.vmem [resolvable:$true] %s596_s8 }
  0x4c   : > { %812 = vmatprep.subr.bf16.mxu0 %v955_v2  ;;  %875 = vmatprep.subr.bf16.mxu1 %v955_v2  ;;  %v960_v7 = vld [vmem:[#allocation5 + $0x20] sm:$0xff]   ;;  %v962_v9 = vld [vmem:[#allocation5 + $0x18] sm:$0xff]   ;;  %v963_v10 = vld [vmem:[#allocation5 + $0x50] sm:$0xff]   ;;  %s1047_s26 = scalar_lea.vmem %s1298_s8, 1024  ;;  %p1366_p11 = scmp.ne.s32.totalorder %s1360_s30, 0 }
  0x4d   : > { %v971_v11 = vld [vmem:[%s1261_s24 + $0x4] ss:$8 sps:$4 sm:$0xff]   ;;  %v964_v13 = vld [vmem:[#allocation5 + $0x10] sm:$0xff]   ;;  %v969_v18 = vld [vmem:[%s1261_s24] ss:$8 sps:$4 sm:$0xff]   ;;  %p1048_p3 = scmp.ne.s32.totalorder %s1298_s8, %s1047_s26  ;;  %s1123_s27 = smov [#allocation7]  }
  0x4e   : > { %v974_v12 = vld [vmem:[%s1261_s24 + $0x44] ss:$8 sps:$4 sm:$0xff]   ;;  %437 = vmatprep.mubr.bf16.mxu0 %v971_v11  ;;  %v972_v19 = vld [vmem:[%s1261_s24 + $0x40] ss:$8 sps:$4 sm:$0xff]   ;;  %v975_v20 = vld [vmem:[%s1261_s24 + $0x14] ss:$8 sps:$4 sm:$0xff]  }
  0x4f   : > { %813 = vmatpush3.bf16.msra.mxu0 %v956_v3  ;;  %883 = vmatpush3.bf16.msra.mxu1 %v956_v3  ;;  %v965_v14 = vld [vmem:[#allocation5 + $0x48] sm:$0xff]   ;;  %v967_v16 = vld [vmem:[#allocation5 + $0x40] sm:$0xff]   ;;  %v977_v21 = vld [vmem:[%s1261_s24 + $0x54] ss:$8 sps:$4 sm:$0xff]   ;;  %p1049_p7 = pnand %p1048_p3, %p1366_p11  ;;  %s1051_s28 = sshll.u32 %s1123_s27, 4  ;;  %s1052_s28 = int_to_ptr.vmem [resolvable:$false] %s1051_s28 }
  0x50   : > { %814 = vmatprep.subr.bf16.mxu0 %v957_v4  ;;  %876 = vmatprep.subr.bf16.mxu1 %v957_v4  ;;  %v966_v15 = vld [vmem:[#allocation5 + $0x8] sm:$0xff]   ;;  %v968_v17 = vld [vmem:[#allocation5] sm:$0xff]   ;;  %v979_v22 = vld [vmem:[%s1261_s24 + $0x10] ss:$8 sps:$4 sm:$0xff]   ;;  %s1053_s3 = scalar_lea.vmem %s1052_s28, 2048  ;;  %p1054_p10 = scmp.lt.s32.totalorder %s1298_s8, %s1052_s28 }
  0x51   : > { %469 = vmatprep.mubr.bf16.mxu1 %v974_v12  ;;  %v980_v23 = vld [vmem:[%s1261_s24 + $0x50] ss:$8 sps:$4 sm:$0xff]   ;;  %v981_v24 = vld [vmem:[%s1261_s24 + $0x24] ss:$8 sps:$4 sm:$0xff]   ;;  %v985_v26 = vld [vmem:[%s1261_s24 + $0x20] ss:$8 sps:$4 sm:$0xff]   ;;  %p1050_p12 = pneg %p1049_p7  ;;  %p1055_p2 = scmp.lt.s32.totalorder %s1053_s3, %s1047_s26 }
  0x52   : > { %v983_v25 = vld [vmem:[%s1261_s24 + $0x64] ss:$8 sps:$4 sm:$0xff]   ;;  %v986_v27 = vld [vmem:[%s1261_s24 + $0x60] ss:$8 sps:$4 sm:$0xff]   ;;  %v987_v28 = vld [vmem:[%s1261_s24 + $0x34] ss:$8 sps:$4 sm:$0xff]  }
  0x53   : > { %815 = vmatpush3.bf16.msra.mxu0 %v958_v5  ;;  %884 = vmatpush3.bf16.msra.mxu1 %v958_v5  ;;  %v989_v29 = vld [vmem:[%s1261_s24 + $0x74] ss:$8 sps:$4 sm:$0xff]   ;;  %v991_v30 = vld [vmem:[%s1261_s24 + $0x30] ss:$8 sps:$4 sm:$0xff]   ;;  %p1056_p13 = por %p1055_p2, %p1054_p10 }
  0x54   : > { %816 = vmatprep.subr.bf16.mxu0 %v959_v6  ;;  %877 = vmatprep.subr.bf16.mxu1 %v959_v6  ;;  %v992_v31 = vld [vmem:[%s1261_s24 + $0x70] ss:$8 sps:$4 sm:$0xff]  }
  0x55   : > { %p1057_p0 = pnand %p1056_p13, %p1050_p12 }
  0x57   : > { %817 = vmatpush3.bf16.msra.mxu0 %v960_v7  ;;  %885 = vmatpush3.bf16.msra.mxu1 %v960_v7 }
  0x58   : > { %818 = vmatprep.subr.bf16.mxu0 %v961_v8  ;;  %878 = vmatprep.subr.bf16.mxu1 %v961_v8 }
  0x5b   : > { %819 = vmatpush3.bf16.msra.mxu0 %v962_v9  ;;  %886 = vmatpush3.bf16.msra.mxu1 %v962_v9 }
  0x5c   : > { %820 = vmatprep.subr.bf16.mxu0 %v963_v10  ;;  %879 = vmatprep.subr.bf16.mxu1 %v963_v10 }
  0x5f   : > { %821 = vmatpush3.bf16.msra.mxu0 %v964_v13  ;;  %887 = vmatpush3.bf16.msra.mxu1 %v964_v13 }
  0x60   : > { %822 = vmatprep.subr.bf16.mxu0 %v965_v14  ;;  %880 = vmatprep.subr.bf16.mxu1 %v965_v14 }
  0x63   : > { %823 = vmatpush3.bf16.msra.mxu0 %v966_v15  ;;  %888 = vmatpush3.bf16.msra.mxu1 %v966_v15 }
  0x64   : > { %824 = vmatprep.subr.bf16.mxu0 %v967_v16  ;;  %881 = vmatprep.subr.bf16.mxu1 %v967_v16 }
  0x67   : > { %825 = vmatpush3.bf16.msra.mxu0 %v968_v17  ;;  %889 = vmatpush3.bf16.msra.mxu1 %v968_v17 }
  0x6a   : > { %438 = vmatmul.mubr.bf16.vlgmr.msra.gmra.mxu0 %v969_v18  ;;  %470 = vmatmul.mubr.bf16.vlgmr.msra.gmra.mxu1 %v972_v19 }
  0x6b   : > { %445 = vmatprep.mubr.bf16.mxu0 %v975_v20  ;;  %477 = vmatprep.mubr.bf16.mxu1 %v977_v21 }
  0x72   : > { %446 = vmatmul.mubr.bf16.gmra.mxu0 %v979_v22  ;;  %478 = vmatmul.mubr.bf16.gmra.mxu1 %v980_v23 }
  0x73   : > { %453 = vmatprep.mubr.bf16.mxu0 %v981_v24  ;;  %485 = vmatprep.mubr.bf16.mxu1 %v983_v25 }
  0x7a   : > { %454 = vmatmul.mubr.bf16.gmra.mxu0 %v985_v26  ;;  %486 = vmatmul.mubr.bf16.gmra.mxu1 %v986_v27 }
  0x7b   : > { %461 = vmatprep.mubr.bf16.mxu0 %v987_v28  ;;  %493 = vmatprep.mubr.bf16.mxu1 %v989_v29 }
  0x82   : > { %462 = vmatmul.mubr.bf16.gmra.mxu0 %v991_v30  ;;  %494 = vmatmul.mubr.bf16.gmra.mxu1 %v992_v31 }
 0x12a   : > { %v826_v32 = vpop.f32.mrf.mxu0  ;;  %v850_v33 = vpop.f32.mrf.mxu1 }
 0x12c   : > { %v827_v34 = vpop.f32.mrf.mxu0  ;;  %v851_v35 = vpop.f32.mrf.mxu1 }
 0x12d   : > { %v828_v40 = vadd.f32 %v827_v34, %v826_v32  ;;  %v852_v41 = vadd.f32 %v851_v35, %v850_v33 }
 0x12e   : > { %v829_v36 = vpop.f32.mrf.mxu0  ;;  %v853_v37 = vpop.f32.mrf.mxu1 }
 0x130   : > { %v830_v38 = vpop.f32.mrf.mxu0  ;;  %v854_v39 = vpop.f32.mrf.mxu1 }
 0x131   : > { %v831_v42 = vadd.f32 %v830_v38, %v829_v36  ;;  %v855_v43 = vadd.f32 %v854_v39, %v853_v37 }
 0x132   : > { %v832_v44 = vpop.f32.mrf.mxu0  ;;  %v856_v45 = vpop.f32.mrf.mxu1 }
 0x133   : > { %v766_v46 = vpack.c.bf16 %v831_v42, %v828_v40  ;;  %v786_v47 = vpack.c.bf16 %v855_v43, %v852_v41 }
 0x134   : > { %v833_v48 = vpop.f32.mrf.mxu0  ;;  %v857_v49 = vpop.f32.mrf.mxu1 }
 0x135   : > { %767 = vst [vmem:[%s1288_s17] sm:$0xff] %v766_v46   ;;  %806 = vst [vmem:[%s1288_s17 + $0x20] sm:$0xff] %v786_v47   ;;  %v834_v54 = vadd.f32 %v833_v48, %v832_v44  ;;  %v858_v55 = vadd.f32 %v857_v49, %v856_v45 }
 0x136   : > { %v835_v50 = vpop.f32.mrf.mxu0  ;;  %v859_v51 = vpop.f32.mrf.mxu1 }
 0x138   : > { %v836_v52 = vpop.f32.mrf.mxu0  ;;  %v860_v53 = vpop.f32.mrf.mxu1 }
 0x139   : > { %v837_v56 = vadd.f32 %v836_v52, %v835_v50  ;;  %v861_v57 = vadd.f32 %v860_v53, %v859_v51 }
 0x13a   : > { %v838_v58 = vpop.f32.mrf.mxu0  ;;  %v862_v59 = vpop.f32.mrf.mxu1 }
 0x13b   : > { %v771_v60 = vpack.c.bf16 %v837_v56, %v834_v54  ;;  %v791_v61 = vpack.c.bf16 %v861_v57, %v858_v55 }
 0x13c   : > { %v839_v62 = vpop.f32.mrf.mxu0  ;;  %v863_v63 = vpop.f32.mrf.mxu1 }
 0x13d   : > { %803 = vst [vmem:[%s1288_s17 + $0x8] sm:$0xff] %v771_v60   ;;  %807 = vst [vmem:[%s1288_s17 + $0x28] sm:$0xff] %v791_v61   ;;  %v840_v4 = vadd.f32 %v839_v62, %v838_v58  ;;  %v864_v5 = vadd.f32 %v863_v63, %v862_v59 }
 0x13e   : > { %v841_v0 = vpop.f32.mrf.mxu0  ;;  %v865_v1 = vpop.f32.mrf.mxu1 }
 0x140   : > { %v842_v2 = vpop.f32.mrf.mxu0  ;;  %v866_v3 = vpop.f32.mrf.mxu1 }
 0x141   : > { %v843_v6 = vadd.f32 %v842_v2, %v841_v0  ;;  %v867_v7 = vadd.f32 %v866_v3, %v865_v1 }
 0x142   : > { %v844_v8 = vpop.f32.mrf.mxu0  ;;  %v868_v9 = vpop.f32.mrf.mxu1 }
 0x143   : > { %v776_v10 = vpack.c.bf16 %v843_v6, %v840_v4  ;;  %v796_v11 = vpack.c.bf16 %v867_v7, %v864_v5 }
 0x144   : > { %v845_v12 = vpop.f32.mrf.mxu0  ;;  %v869_v13 = vpop.f32.mrf.mxu1 }
 0x145   : > { %804 = vst [vmem:[%s1288_s17 + $0x10] sm:$0xff] %v776_v10   ;;  %808 = vst [vmem:[%s1288_s17 + $0x30] sm:$0xff] %v796_v11   ;;  %v846_v18 = vadd.f32 %v845_v12, %v844_v8  ;;  %v870_v19 = vadd.f32 %v869_v13, %v868_v9 }
 0x146   : > { %v847_v14 = vpop.f32.mrf.mxu0  ;;  %v871_v15 = vpop.f32.mrf.mxu1 }
 0x148   : > { %v848_v16 = vpop.f32.mrf.mxu0  ;;  %v872_v17 = vpop.f32.mrf.mxu1 }
 0x149   : > { %v849_v20 = vadd.f32 %v848_v16, %v847_v14  ;;  %v873_v21 = vadd.f32 %v872_v17, %v871_v15 }
 0x14b   : > { %v781_v22 = vpack.c.bf16 %v849_v20, %v846_v18  ;;  %v801_v23 = vpack.c.bf16 %v873_v21, %v870_v19 }
 0x14d   : > { %805 = vst [vmem:[%s1288_s17 + $0x18] sm:$0xff] %v781_v22   ;;  %809 = vst [vmem:[%s1288_s17 + $0x38] sm:$0xff] %v801_v23  }
 0x14e   : > { %1060 = shalt.err (!%p1057_p0)
}
 0x14f   : > { %s1061_s4 = scalar_lea.hbm %s1303_s25, 1024  ;;  %s1065_s7 = scalar_lea.hbm %s1350_s2, 2048 }
 0x150   : > { %p1062_p5 = scmp.ne.s32.totalorder %s1303_s25, %s1061_s4  ;;  %p1066_p4 = scmp.lt.s32.totalorder %s1303_s25, %s1350_s2 }
 0x151   : > { %p1067_p6 = scmp.lt.s32.totalorder %s1065_s7, %s1061_s4 }
 0x152   : > { %p1063_p9 = pnand %p1062_p5, %p1366_p11 }
 0x153   : > { %p1068_p8 = por %p1067_p6, %p1066_p4 }
 0x154   : > { %p1064_p1 = pneg %p1063_p9 }
 0x156   : > { %p1069_p3 = pnand %p1068_p8, %p1064_p1 }
 0x158   : > { %1072 = shalt.err (!%p1069_p3)
}
 0x159   : > { %s1124_s24 = smov 64   ;;  %s1125_s15 = smov 4  }
 0x15a   : > { %896 = dma.vmem_to_hbm [thread:$0]  (%p1366_p11), %s1298_s8, 1024, %s1303_s25, %s583_s13, %s1124_s24, %s1124_s24, %s1125_s15  }
 0x15b PF: > { %s611_s17 = sand.u32 1, %s1103_s9   ;;  %p1367_p7 = scmp.ne.s32.totalorder %s1356_s16, 0 }
 0x15c   : > { %p1368_p12 = scmp.ge.s32.totalorder %s1115_s12, 2  ;;  %s612_s18 = scalar_lea.sflag [#allocation4], %s611_s17 }
 0x15e   : > { %p907_p10 = pnand %p1368_p12, %p1367_p7 }
 0x160   : > { %p908_p2 = pneg %p907_p10 }
 0x162   : > { %1098 = dma.done.wait (%p908_p2), %s612_s18, 1024  }
 0x163   : > { %1100 = vsyncadd (%p908_p2), %s612_s18, 4294966272  ;;  %p16_p13 = scmp.ge.s32.totalorder %s1195_s21, 4   ;;  %s1369_s9 = smov %s1107_s10 }
 0x164   : > { %s1370_s10 = smov %s1111_s11  ;;  %s1371_s11 = smov %s1212_s29 }
 0x165   : > { %s1372_s12 = smov %s1195_s21  ;;  %18 = sbr.rel (!%p16_p13) target bundleno = 6 (0x6), region = 77 }
 0x16a   :  { %617 = vsyncpa [#allocation3], 1 }
 0x16b   :  { %619 = vsyncpa [#allocation3 + $0x1], 1 }
 0x16c   :  { %620 = vsyncpa [#allocation6], 1 }
 0x16d   :  { %621 = vsyncpa [#allocation4], 1 }
 0x16e   :  { %623 = vsyncpa [#allocation4 + $0x1], 1 }

</bundles_post_ra>
